<compile_context>
chip_gen: v7x
topology: tpu7x:2x2x1
jax: 0.10.0
libtpu: 0.0.40
codegen_flags: <defaults>
</compile_context>

<pallas_src>
import functools

import jax
import jax.numpy as jnp
from jax.experimental import pallas as pl
from jax.experimental.pallas import tpu as pltpu


def _round_up(x, m):
    return (x + m - 1) // m * m


def _per_step_vmem_bytes(tn, tv, d_model, with_logits):
    need = (2 * tn * d_model * 2      # x tile (bf16), double buffered
            + 2 * d_model * tv * 2    # weight tile (bf16), double buffered
            + 2 * tv * 4              # bias tile (f32), double buffered
            + 2 * tn * 4              # labels tile (i32), double buffered
            + 2 * 2 * tn * 4          # nll / valid outputs, double buffered
            + 3 * tn * 4)             # online-logsumexp scratch
    if with_logits:
        need += 2 * tn * tv * 4       # logits output tile (f32), double buffered
    return need


def _select_tiles(n_tok, d_model, v_pad, vmem_budget, with_logits):
    # Vocab tile: lane-dense (multiple of 128), divides the padded vocab, and
    # keeps the weight double-buffer under ~1/3 of the budget (v7x: 64 MiB VMEM).
    tv = 128
    for cand in (2048, 1024, 512, 256, 128):
        if (cand <= v_pad and v_pad % cand == 0
                and 2 * d_model * cand * 2 <= vmem_budget // 3):
            tv = cand
            break
    # Token tile: largest that still fits the budget (weight is re-streamed
    # from HBM once per token tile, so bigger tn = less weight DMA traffic).
    n_min = _round_up(max(n_tok, 1), 16)
    tn = 16
    for cand in (1024, 512, 256, 128, 64, 32, 16):
        if cand > n_min:
            continue
        if _per_step_vmem_bytes(cand, tv, d_model, with_logits) <= vmem_budget:
            tn = cand
            break
    return tn, tv


def _ce_kernel(padding, tile_v, with_logits, x_ref, wt_ref, b_ref, labels_ref,
               *rest):
    # x_ref:      (tn, D)  bf16   embedded token tile
    # wt_ref:     (D, tv)  bf16   pre-transposed weight tile
    # b_ref:      (1, tv)  f32    bias tile (-1e30 on padded vocab columns)
    # labels_ref: (tn, 1)  i32    labels for this token tile
    # rest: [logits_ref (tn,tv) f32]?, nll_ref (tn,1), valid_ref (tn,1),
    #       m_sc / l_sc / ll_sc (tn,1) f32 scratch
    if with_logits:
        logits_ref, nll_ref, valid_ref, m_sc, l_sc, ll_sc = rest
    else:
        nll_ref, valid_ref, m_sc, l_sc, ll_sc = rest
        logits_ref = None

    j = pl.program_id(1)

    @pl.when(j == 0)
    def _():
        m_sc[...] = jnp.full_like(m_sc, -jnp.inf)
        l_sc[...] = jnp.zeros_like(l_sc)
        ll_sc[...] = jnp.zeros_like(ll_sc)

    # (tn, D) @ (D, tv) on the MXU, f32 accumulation; weight already transposed
    # HBM-side so there is no per-step XLU transpose.
    logits = jnp.dot(x_ref[...], wt_ref[...],
                     preferred_element_type=jnp.float32) + b_ref[...]
    if with_logits:
        logits_ref[...] = logits

    labels = labels_ref[...]                                      # (tn, 1) i32

    # Label-logit gather folded into this vocab tile: compare the tile-local
    # column iota against (label - j*tv) -- saves one (tn, tv) i32 add/step.
    col = jax.lax.broadcasted_iota(jnp.int32, logits.shape, 1)
    ll_sc[...] += jnp.sum(
        jnp.where(col == (labels - j * tile_v), logits, 0.0),
        axis=-1, keepdims=True)

    # Online logsumexp update (all f32).
    m_prev = m_sc[...]
    m_new = jnp.maximum(m_prev, jnp.max(logits, axis=-1, keepdims=True))
    l_sc[...] = (l_sc[...] * jnp.exp(m_prev - m_new)
                 + jnp.sum(jnp.exp(logits - m_new), axis=-1, keepdims=True))
    m_sc[...] = m_new

    @pl.when(j == pl.num_programs(1) - 1)
    def _():
        lse = jnp.log(l_sc[...]) + m_sc[...]                      # (tn, 1)
        nll = lse - ll_sc[...]                                    # (tn, 1)
        valid = (labels != jnp.int32(padding)).astype(jnp.float32)
        nll_ref[...] = nll * valid                                # ignore_index
        valid_ref[...] = valid


def my_model_forward(params, inputs, labels, *, padding, return_logits=True):
    """Mirrors myModel.forward: returns {'loss': scalar, 'logits': (B*S, V)}."""
    embed_table = params["embed"]          # (V, D) f32
    w = params["out_w"]                    # (V, D) f32 (PyTorch nn.Linear layout)
    b = params["out_b"]                    # (V,)   f32

    vocab_size, d_model = embed_table.shape
    flat_inputs = inputs.reshape(-1)
    flat_labels = labels.reshape(-1).astype(jnp.int32)
    n_tok = flat_inputs.shape[0]

    # --- per-chip VMEM budget -------------------------------------------------
    try:
        phys_vmem = int(pltpu.get_tpu_info().vmem_capacity_bytes)
    except Exception:
        phys_vmem = 64 * 1024 * 1024       # conservative (v7x per-core) fallback
    vmem_budget = int(phys_vmem * 0.7)     # headroom for compiler internals

    # Pad vocab to a lane-dense multiple of 128; padded columns get -1e30 bias
    # so they contribute 0 to logsumexp and can never be a label.
    v_pad = _round_up(vocab_size, 128)

    tn, tv = _select_tiles(n_tok, d_model, v_pad, vmem_budget, return_logits)

    n_pad = _round_up(n_tok, tn)
    if n_pad != n_tok:
        flat_inputs = jnp.pad(flat_inputs, (0, n_pad - n_tok))
        flat_labels = jnp.pad(flat_labels, (0, n_pad - n_tok),
                              constant_values=padding)   # padded rows -> ignored

    # TODO(synk): fuse the embedding gather into the kernel via scalar prefetch
    #             + pl.Element row gather; kept in plain JAX (cheap vs matmul).
    x = jnp.take(embed_table, flat_inputs, axis=0).astype(jnp.bfloat16)  # (Np, D)

    # One-time HBM-side transpose to (D, V) for standard-layout MXU tiles.
    wt = w.T.astype(jnp.bfloat16)                                        # (D, V)
    b2 = b.reshape(1, vocab_size).astype(jnp.float32)                    # (1, V)
    if v_pad != vocab_size:
        wt = jnp.pad(wt, ((0, 0), (0, v_pad - vocab_size)))
        b2 = jnp.pad(b2, ((0, 0), (0, v_pad - vocab_size)),
                     constant_values=-1e30)
    labels2 = flat_labels.reshape(n_pad, 1)                              # (Np, 1)

    grid = (n_pad // tn, v_pad // tv)
    kernel = functools.partial(_ce_kernel, padding, tv, return_logits)

    out_shape = []
    out_specs = []
    if return_logits:
        out_shape.append(jax.ShapeDtypeStruct((n_pad, v_pad), jnp.float32))
        out_specs.append(pl.BlockSpec((tn, tv), lambda i, j: (i, j)))
    out_shape += [jax.ShapeDtypeStruct((n_pad, 1), jnp.float32),
                  jax.ShapeDtypeStruct((n_pad, 1), jnp.float32)]
    out_specs += [pl.BlockSpec((tn, 1), lambda i, j: (i, 0)),
                  pl.BlockSpec((tn, 1), lambda i, j: (i, 0))]

    per_step = _per_step_vmem_bytes(tn, tv, d_model, return_logits)
    vmem_limit = int(min(max(2 * per_step, 32 * 1024 * 1024), vmem_budget))

    cost = pl.CostEstimate(
        flops=2 * n_pad * d_model * v_pad,
        transcendentals=n_pad * v_pad,
        bytes_accessed=(x.size * 2                          # x read
                        + wt.size * 2 * (n_pad // tn)       # weight re-streamed
                        + b2.size * 4 + labels2.size * 4
                        + (n_pad * v_pad * 4 if return_logits else 0)
                        + 2 * n_pad * 4),
    )

    outs = pl.pallas_call(
        kernel,
        out_shape=tuple(out_shape),
        grid_spec=pltpu.PrefetchScalarGridSpec(
            num_scalar_prefetch=0,
            grid=grid,
            in_specs=[
                pl.BlockSpec((tn, d_model), lambda i, j: (i, 0)),   # x
                pl.BlockSpec((d_model, tv), lambda i, j: (0, j)),   # w^T (D, V)
                pl.BlockSpec((1, tv), lambda i, j: (0, j)),         # bias
                pl.BlockSpec((tn, 1), lambda i, j: (i, 0)),         # labels
            ],
            out_specs=tuple(out_specs),
            scratch_shapes=[
                pltpu.VMEM((tn, 1), jnp.float32),   # running max
                pltpu.VMEM((tn, 1), jnp.float32),   # running sum-exp
                pltpu.VMEM((tn, 1), jnp.float32),   # running label logit
            ],
        ),
        compiler_params=pltpu.CompilerParams(
            dimension_semantics=("parallel", "arbitrary"),
            vmem_limit_bytes=vmem_limit,
        ),
        cost_estimate=cost,
    )(x, wt, b2, labels2)

    if return_logits:
        logits, nll, valid = outs
    else:
        nll, valid = outs
        logits = None

    # nn.CrossEntropyLoss(ignore_index=padding) mean over non-ignored targets.
    # NOTE: if every label == padding this is 0/0 = NaN, matching PyTorch.
    loss = jnp.sum(nll) / jnp.sum(valid)
    result = {"loss": loss}
    if return_logits:
        result["logits"] = logits[:n_tok, :vocab_size]
    return result


if __name__ == "__main__":
    vocab_size = 128
    d_model = 32
    padding = 0
    batch, seq = 2, 8

    key = jax.random.PRNGKey(0)
    k_embed, k_w, k_b, k_in, k_lab = jax.random.split(key, 5)

    params = {
        "embed": jax.random.normal(k_embed, (vocab_size, d_model), jnp.float32),
        "out_w": jax.random.normal(k_w, (vocab_size, d_model), jnp.float32) * 0.05,
        "out_b": jax.random.normal(k_b, (vocab_size,), jnp.float32) * 0.01,
    }

    inputs = jax.random.randint(k_in, (batch, seq), 0, vocab_size, jnp.int32)
    labels = jax.random.randint(k_lab, (batch, seq), 0, vocab_size, jnp.int32)
    # sprinkle in some padding labels so the ignore_index path is exercised
    labels = labels.at[0, 0].set(padding).at[1, 3].set(padding)

    out = my_model_forward(params, inputs, labels, padding=padding)
    jax.block_until_ready(out)

    # Loss-only path (no (N, V) logits writeback) must agree on the loss.
    out_loss_only = my_model_forward(params, inputs, labels, padding=padding,
                                     return_logits=False)
    jax.block_until_ready(out_loss_only)

    # Pure-JAX reference using the same bf16-rounded matmul inputs (kernel
    # accumulates in f32 and does all softmax / CE math in f32).
    x_f = jnp.take(params["embed"], inputs.reshape(-1), axis=0)
    xb = x_f.astype(jnp.bfloat16).astype(jnp.float32)
    wb = params["out_w"].astype(jnp.bfloat16).astype(jnp.float32)
    logits_ref = xb @ wb.T + params["out_b"]
    lse_ref = jax.nn.logsumexp(logits_ref, axis=-1)
    flat_lab = labels.reshape(-1)
    nll_ref = lse_ref - jnp.take_along_axis(
        logits_ref, flat_lab[:, None], axis=-1)[:, 0]
    mask = flat_lab != padding
    loss_ref = jnp.sum(jnp.where(mask, nll_ref, 0.0)) / jnp.sum(mask)

    assert out["logits"].shape == (batch * seq, vocab_size)
    assert jnp.allclose(out["logits"], logits_ref, atol=1e-4, rtol=1e-4)
    assert jnp.allclose(out["loss"], loss_ref, atol=1e-4, rtol=1e-4)
    assert jnp.allclose(out_loss_only["loss"], out["loss"], atol=1e-6, rtol=1e-6)

    print("KERNEL_OK")
</pallas_src>

<mosaic_0001>
module attributes {stable_mosaic.version = 11 : i64} {
  func.func @_ce_kernel(%arg0: i32, %arg1: i32, %arg2: memref<16x32xbf16, #tpu.memory_space<vmem>>, %arg3: memref<32x128xbf16, #tpu.memory_space<vmem>>, %arg4: memref<1x128xf32, #tpu.memory_space<vmem>>, %arg5: memref<16x1xi32, #tpu.memory_space<vmem>>, %arg6: memref<16x128xf32, #tpu.memory_space<vmem>>, %arg7: memref<16x1xf32, #tpu.memory_space<vmem>>, %arg8: memref<16x1xf32, #tpu.memory_space<vmem>>, %arg9: memref<16x1xf32, #tpu.memory_space<vmem>>, %arg10: memref<16x1xf32, #tpu.memory_space<vmem>>, %arg11: memref<16x1xf32, #tpu.memory_space<vmem>>) attributes {dimension_semantics = [#tpu.dimension_semantics<parallel>, #tpu.dimension_semantics<arbitrary>], iteration_bounds = array<i64: 1, 1>, scalar_prefetch = 0 : i64, scratch_operands = 3 : i64, tpu.core_type = #tpu.core_type<tc>, window_params = [{transform_indices = @transform_0, window_bounds = array<i64: 16, 32>}, {transform_indices = @transform_1, window_bounds = array<i64: 32, 128>}, {transform_indices = @transform_2, window_bounds = array<i64: 1, 128>}, {transform_indices = @transform_3, window_bounds = array<i64: 16, 1>}, {transform_indices = @transform_4, window_bounds = array<i64: 16, 128>}, {transform_indices = @transform_5, window_bounds = array<i64: 16, 1>}, {transform_indices = @transform_6, window_bounds = array<i64: 16, 1>}]} {
    %c0_i32 = arith.constant 0 : i32
    %0 = arith.cmpi eq, %arg1, %c0_i32 : i32
    %1 = arith.extui %0 : i1 to i32
    %c0_i32_0 = arith.constant 0 : i32
    %2 = arith.cmpi ne, %1, %c0_i32_0 : i32
    scf.if %2 {
      %cst_28 = arith.constant 0xFF800000 : f32
      %43 = vector.broadcast %cst_28 : f32 to vector<16x1xf32>
      %c0_29 = arith.constant 0 : index
      %c0_30 = arith.constant 0 : index
      %44 = vector.load %arg9[%c0_29, %c0_30] : memref<16x1xf32, #tpu.memory_space<vmem>>, vector<16x1xf32>
      tpu.vector_store %arg9[%c0_29, %c0_30], %43 {strides = array<i32>} : memref<16x1xf32, #tpu.memory_space<vmem>>, vector<16x1xf32>,
      %cst_31 = arith.constant 0.000000e+00 : f32
      %45 = vector.broadcast %cst_31 : f32 to vector<16x1xf32>
      %c0_32 = arith.constant 0 : index
      %c0_33 = arith.constant 0 : index
      %46 = vector.load %arg10[%c0_32, %c0_33] : memref<16x1xf32, #tpu.memory_space<vmem>>, vector<16x1xf32>
      tpu.vector_store %arg10[%c0_32, %c0_33], %45 {strides = array<i32>} : memref<16x1xf32, #tpu.memory_space<vmem>>, vector<16x1xf32>,
      %cst_34 = arith.constant 0.000000e+00 : f32
      %47 = vector.broadcast %cst_34 : f32 to vector<16x1xf32>
      %c0_35 = arith.constant 0 : index
      %c0_36 = arith.constant 0 : index
      %48 = vector.load %arg11[%c0_35, %c0_36] : memref<16x1xf32, #tpu.memory_space<vmem>>, vector<16x1xf32>
      tpu.vector_store %arg11[%c0_35, %c0_36], %47 {strides = array<i32>} : memref<16x1xf32, #tpu.memory_space<vmem>>, vector<16x1xf32>,
    } else {
    }
    %c0 = arith.constant 0 : index
    %c0_1 = arith.constant 0 : index
    %3 = vector.load %arg2[%c0, %c0_1] : memref<16x32xbf16, #tpu.memory_space<vmem>>, vector<16x32xbf16>
    %c0_2 = arith.constant 0 : index
    %c0_3 = arith.constant 0 : index
    %4 = vector.load %arg3[%c0_2, %c0_3] : memref<32x128xbf16, #tpu.memory_space<vmem>>, vector<32x128xbf16>
    %cst = arith.constant dense<0.000000e+00> : vector<16x128xf32>
    %5 = tpu.matmul %3, %4, %cst {dimension_numbers = #tpu.dot_dimension_numbers<[1], [0], [0], [1], [0, 0, 1, 1], [], []>} : vector<16x32xbf16>, vector<32x128xbf16>, vector<16x128xf32> -> vector<16x128xf32>
    %c0_4 = arith.constant 0 : index
    %c0_5 = arith.constant 0 : index
    %6 = vector.load %arg4[%c0_4, %c0_5] : memref<1x128xf32, #tpu.memory_space<vmem>>, vector<1x128xf32>
    %7 = vector.broadcast %6 : vector<1x128xf32> to vector<16x128xf32>
    %8 = arith.addf %5, %7 : vector<16x128xf32>
    %c0_6 = arith.constant 0 : index
    %c0_7 = arith.constant 0 : index
    %9 = vector.load %arg6[%c0_6, %c0_7] : memref<16x128xf32, #tpu.memory_space<vmem>>, vector<16x128xf32>
    tpu.vector_store %arg6[%c0_6, %c0_7], %8 {strides = array<i32>} : memref<16x128xf32, #tpu.memory_space<vmem>>, vector<16x128xf32>,
    %c0_8 = arith.constant 0 : index
    %c0_9 = arith.constant 0 : index
    %10 = vector.load %arg5[%c0_8, %c0_9] : memref<16x1xi32, #tpu.memory_space<vmem>>, vector<16x1xi32>
    %11 = tpu.iota {dimensions = array<i32: 1>} : vector<16x128xi32>
    %c0_10 = arith.constant 0 : index
    %c0_11 = arith.constant 0 : index
    %12 = vector.load %arg11[%c0_10, %c0_11] : memref<16x1xf32, #tpu.memory_space<vmem>>, vector<16x1xf32>
    %c128_i32 = arith.constant 128 : i32
    %13 = arith.muli %arg1, %c128_i32 : i32
    %14 = vector.broadcast %13 : i32 to vector<16x1xi32>
    %15 = arith.subi %10, %14 : vector<16x1xi32>
    %16 = vector.broadcast %15 : vector<16x1xi32> to vector<16x128xi32>
    %17 = arith.cmpi eq, %11, %16 : vector<16x128xi32>
    %cst_12 = arith.constant 0.000000e+00 : f32
    %18 = vector.broadcast %cst_12 : f32 to vector<16x128xf32>
    %19 = arith.select %17, %8, %18 : vector<16x128xi1>, vector<16x128xf32>
    %cst_13 = arith.constant dense<0.000000e+00> : vector<16xf32>
    %20 = vector.multi_reduction <add>, %19, %cst_13 [1] : vector<16x128xf32> to vector<16xf32>
    %21 = vector.shape_cast %20 : vector<16xf32> to vector<16x1xf32>
    %22 = arith.addf %12, %21 : vector<16x1xf32>
    %c0_14 = arith.constant 0 : index
    %c0_15 = arith.constant 0 : index
    %23 = vector.load %arg11[%c0_14, %c0_15] : memref<16x1xf32, #tpu.memory_space<vmem>>, vector<16x1xf32>
    tpu.vector_store %arg11[%c0_14, %c0_15], %22 {strides = array<i32>} : memref<16x1xf32, #tpu.memory_space<vmem>>, vector<16x1xf32>,
    %c0_16 = arith.constant 0 : index
    %c0_17 = arith.constant 0 : index
    %24 = vector.load %arg9[%c0_16, %c0_17] : memref<16x1xf32, #tpu.memory_space<vmem>>, vector<16x1xf32>
    %cst_18 = arith.constant dense<0xFF800000> : vector<16xf32>
    %25 = vector.multi_reduction <maximumf>, %8, %cst_18 [1] : vector<16x128xf32> to vector<16xf32>
    %26 = vector.shape_cast %25 : vector<16xf32> to vector<16x1xf32>
    %27 = arith.maximumf %24, %26 : vector<16x1xf32>
    %c0_19 = arith.constant 0 : index
    %c0_20 = arith.constant 0 : index
    %28 = vector.load %arg10[%c0_19, %c0_20] : memref<16x1xf32, #tpu.memory_space<vmem>>, vector<16x1xf32>
    %29 = arith.subf %24, %27 : vector<16x1xf32>
    %30 = math.exp %29 : vector<16x1xf32>
    %31 = arith.mulf %28, %30 : vector<16x1xf32>
    %32 = vector.broadcast %27 : vector<16x1xf32> to vector<16x128xf32>
    %33 = arith.subf %8, %32 : vector<16x128xf32>
    %34 = math.exp %33 : vector<16x128xf32>
    %cst_21 = arith.constant dense<0.000000e+00> : vector<16xf32>
    %35 = vector.multi_reduction <add>, %34, %cst_21 [1] : vector<16x128xf32> to vector<16xf32>
    %36 = vector.shape_cast %35 : vector<16xf32> to vector<16x1xf32>
    %37 = arith.addf %31, %36 : vector<16x1xf32>
    %c0_22 = arith.constant 0 : index
    %c0_23 = arith.constant 0 : index
    %38 = vector.load %arg10[%c0_22, %c0_23] : memref<16x1xf32, #tpu.memory_space<vmem>>, vector<16x1xf32>
    tpu.vector_store %arg10[%c0_22, %c0_23], %37 {strides = array<i32>} : memref<16x1xf32, #tpu.memory_space<vmem>>, vector<16x1xf32>,
    %c0_24 = arith.constant 0 : index
    %c0_25 = arith.constant 0 : index
    %39 = vector.load %arg9[%c0_24, %c0_25] : memref<16x1xf32, #tpu.memory_space<vmem>>, vector<16x1xf32>
    tpu.vector_store %arg9[%c0_24, %c0_25], %27 {strides = array<i32>} : memref<16x1xf32, #tpu.memory_space<vmem>>, vector<16x1xf32>,
    %c0_i32_26 = arith.constant 0 : i32
    %40 = arith.cmpi eq, %arg1, %c0_i32_26 : i32
    %41 = arith.extui %40 : i1 to i32
    %c0_i32_27 = arith.constant 0 : i32
    %42 = arith.cmpi ne, %41, %c0_i32_27 : i32
    scf.if %42 {
      %c0_28 = arith.constant 0 : index
      %c0_29 = arith.constant 0 : index
      %43 = vector.load %arg10[%c0_28, %c0_29] : memref<16x1xf32, #tpu.memory_space<vmem>>, vector<16x1xf32>
      %44 = math.log %43 : vector<16x1xf32>
      %c0_30 = arith.constant 0 : index
      %c0_31 = arith.constant 0 : index
      %45 = vector.load %arg9[%c0_30, %c0_31] : memref<16x1xf32, #tpu.memory_space<vmem>>, vector<16x1xf32>
      %46 = arith.addf %44, %45 : vector<16x1xf32>
      %c0_32 = arith.constant 0 : index
      %c0_33 = arith.constant 0 : index
      %47 = vector.load %arg11[%c0_32, %c0_33] : memref<16x1xf32, #tpu.memory_space<vmem>>, vector<16x1xf32>
      %48 = arith.subf %46, %47 : vector<16x1xf32>
      %c0_i32_34 = arith.constant 0 : i32
      %49 = vector.broadcast %c0_i32_34 : i32 to vector<16x1xi32>
      %50 = arith.cmpi ne, %10, %49 : vector<16x1xi32>
      %51 = arith.extui %50 : vector<16x1xi1> to vector<16x1xi32>
      %52 = arith.sitofp %51 : vector<16x1xi32> to vector<16x1xf32>
      %53 = arith.mulf %48, %52 : vector<16x1xf32>
      %c0_35 = arith.constant 0 : index
      %c0_36 = arith.constant 0 : index
      %54 = vector.load %arg7[%c0_35, %c0_36] : memref<16x1xf32, #tpu.memory_space<vmem>>, vector<16x1xf32>
      tpu.vector_store %arg7[%c0_35, %c0_36], %53 {strides = array<i32>} : memref<16x1xf32, #tpu.memory_space<vmem>>, vector<16x1xf32>,
      %c0_37 = arith.constant 0 : index
      %c0_38 = arith.constant 0 : index
      %55 = vector.load %arg8[%c0_37, %c0_38] : memref<16x1xf32, #tpu.memory_space<vmem>>, vector<16x1xf32>
      tpu.vector_store %arg8[%c0_37, %c0_38], %52 {strides = array<i32>} : memref<16x1xf32, #tpu.memory_space<vmem>>, vector<16x1xf32>,
    } else {
    }
    return
  }
  func.func @transform_0(%arg0: i32, %arg1: i32) -> (i32, i32) {
    %c0_i32 = arith.constant 0 : i32
    %c0_i32_0 = arith.constant 0 : i32
    return %arg0, %c0_i32 : i32, i32
  }
  func.func @transform_1(%arg0: i32, %arg1: i32) -> (i32, i32) {
    %c0_i32 = arith.constant 0 : i32
    %c0_i32_0 = arith.constant 0 : i32
    return %c0_i32, %arg1 : i32, i32
  }
  func.func @transform_2(%arg0: i32, %arg1: i32) -> (i32, i32) {
    %c0_i32 = arith.constant 0 : i32
    %c0_i32_0 = arith.constant 0 : i32
    return %c0_i32, %arg1 : i32, i32
  }
  func.func @transform_3(%arg0: i32, %arg1: i32) -> (i32, i32) {
    %c0_i32 = arith.constant 0 : i32
    %c0_i32_0 = arith.constant 0 : i32
    return %arg0, %c0_i32 : i32, i32
  }
  func.func @transform_4(%arg0: i32, %arg1: i32) -> (i32, i32) {
    %c0_i32 = arith.constant 0 : i32
    return %arg0, %arg1 : i32, i32
  }
  func.func @transform_5(%arg0: i32, %arg1: i32) -> (i32, i32) {
    %c0_i32 = arith.constant 0 : i32
    %c0_i32_0 = arith.constant 0 : i32
    return %arg0, %c0_i32 : i32, i32
  }
  func.func @transform_6(%arg0: i32, %arg1: i32) -> (i32, i32) {
    %c0_i32 = arith.constant 0 : i32
    %c0_i32_0 = arith.constant 0 : i32
    return %arg0, %c0_i32 : i32, i32
  }
}

</mosaic_0001>

<bundles_post_ra>
// kernel: tpu_custom_call.1
= control target key start
LH: loop header
LB: loop body
LE: loop exit
PB: predicated region body
PF: predicated region fallthrough
CT: control target
= control target key end

     0   :  { %12 = vsyncpa [#allocation6], 0  ;;  %s464_s0 = inlined_call_operand.hbm [shape: bf16[16,32], index: 0, kind: input, shape index: {}]   ;;  %s465_s1 = inlined_call_operand.vmem [shape: bf16[32,128], index: 1, kind: input, shape index: {}]   ;;  %s466_s2 = inlined_call_operand.vmem [shape: f32[1,128], index: 2, kind: input, shape index: {}]   ;;  %s467_s3 = inlined_call_operand.vmem [shape: s32[16,1], index: 3, kind: input, shape index: {}]   ;;  %s468_s4 = inlined_call_operand.hbm [shape: f32[16,128], index: 4, kind: output, shape index: {0}]   ;;  %s469_s5 = inlined_call_operand.vmem [shape: f32[16,1], index: 5, kind: output, shape index: {1}]   ;;  %s470_s6 = inlined_call_operand.vmem [shape: f32[16,1], index: 6, kind: output, shape index: {2}]  }
   0x1   :  { %13 = vsyncpa [#allocation7], 0  ;;  %s344_s21 = smov [#allocation5]   ;;  %s296_s25 = scalar_lea.hbm %s464_s0, 128 }
   0x2   :  { %s19_s22 = sshll.u32 %s344_s21, 4  ;;  %p297_p0 = scmp.ne.s32.totalorder %s464_s0, %s296_s25  ;;  %s20_s22 = int_to_ptr.vmem [resolvable:$true] %s19_s22 }
   0x3   :  { %p300_p1 = scmp.lt.u32.totalorder %s296_s25, %s464_s0 }
   0x5   :  { %p302_p2 = pnand %p300_p1, %p297_p0 }
   0x7   :  { %305 = shalt.err (!%p302_p2)
}
   0x8   :  { %s306_s30 = scalar_lea.vmem %s20_s22, 128  ;;  %p311_p4 = scmp.lt.s32.totalorder %s20_s22, %s20_s22 }
   0x9   :  { %p307_p3 = scmp.ne.s32.totalorder %s20_s22, %s306_s30  ;;  %p312_p5 = scmp.lt.s32.totalorder %s306_s30, %s306_s30 }
   0xb   :  { %p313_p6 = por %p312_p5, %p311_p4 }
   0xd   :  { %p314_p7 = pnand %p313_p6, %p307_p3 }
   0xf   :  { %317 = shalt.err (!%p314_p7)
}
  0x10   :  { %s345_s7 = smov 64   ;;  %s346_s8 = smov 4  }
  0x11   :  { %25 = dma.hbm_to_vmem [thread:$0]  %s464_s0, 128, %s20_s22, [#allocation6], %s345_s7, %s345_s7, %s346_s8  }
  0x12   :  { %340 = dma.done.wait [#allocation6], 128  }
  0x13   :  { %341 = vsyncadd [#allocation6], 4294967168  ;;  %v347_v0 = vmov 0.0   ;;  %vm348_vm0 = vmmov 0   ;;  %v281_v1 = vld [vmem:[%s465_s1] sm:$0xff]   ;;  %v282_v2 = vld [vmem:[%s465_s1 + $0x8] sm:$0xff]   ;;  %v126_v24 = vlaneseq }
  0x14   :  { %261 = vmatprep.subr.bf16.mxu0 %v347_v0  ;;  %265 = vmatprep.mubr.msk.bf16.mxu0 %vm348_vm0, %v347_v0  ;;  %v283_v3 = vld [vmem:[#allocation5] sm:$0xff]   ;;  %vm77_vm1 = vcmask 261120   ;;  %vm40_vm2 = vcmask 7168   ;;  %v124_v4 = vld [vmem:[%s467_s3] sm:$0xff]  ;;  %v349_v5 = vmov 0   ;;  %v350_v7 = vmov -inf  }
  0x15   :  { %262 = vmatpush3.bf16.msra.mxu0 %v281_v1  ;;  %280 = vset.pattern.permute.xlu0 %v349_v5  ;;  %vm214_vm3 = vcmp.ne.s32.totalorder %v124_v4, 0  ;;  %43 = vst.msk [vmem:[#allocation3] sm:$0xff] %vm40_vm2, %v347_v0  ;;  %44 = vst.msk [vmem:[#allocation3 + $0x8] sm:$0xff] %vm40_vm2, %v347_v0  ;;  %v251_v8 = vld [vmem:[%s466_s2] ss:$0 sm:$0xff]  ;;  %v125_v15 = vld [vmem:[%s467_s3 + $0x8] sm:$0xff] }
  0x16   :  { %263 = vmatprep.subr.bf16.mxu0 %v347_v0  ;;  %45 = vst.msk [vmem:[#allocation4] sm:$0xff] %vm40_vm2, %v347_v0  ;;  %46 = vst.msk [vmem:[#allocation4 + $0x8] sm:$0xff] %vm40_vm2, %v347_v0  ;;  %279 = vset.pattern.permute.xlu1 %v349_v5  ;;  %v414_v6 = vsel %vm214_vm3, 1.0, %v347_v0  ;;  %vm215_vm4 = vcmp.ne.s32.totalorder %v125_v15, 0  ;;  %v127_v26 = vand.u32 127, %v126_v24  ;;  %s351_s3 = smov [#allocation8]  }
  0x17   :  { %224 = vst.msk [vmem:[%s470_s6] sm:$0xff] %vm40_vm2, %v414_v6  ;;  %41 = vst.msk [vmem:[#allocation2] sm:$0xff] %vm40_vm2, %v350_v7  ;;  %v429_v16 = vsel %vm215_vm4, 1.0, %v347_v0 }
  0x18   :  { %42 = vst.msk [vmem:[#allocation2 + $0x8] sm:$0xff] %vm40_vm2, %v350_v7  ;;  %225 = vst.msk [vmem:[%s470_s6 + $0x8] sm:$0xff] %vm40_vm2, %v429_v16  ;;  %s231_s6 = sshll.u32 %s351_s3, 4  ;;  %s232_s6 = int_to_ptr.vmem [resolvable:$true] %s231_s6 }
  0x19   :  { %264 = vmatpush3.bf16.msra.mxu0 %v282_v2  ;;  %s318_s22 = scalar_lea.vmem %s232_s6, 256  ;;  %p323_p9 = scmp.lt.s32.totalorder %s232_s6, %s232_s6 }
  0x1a   :  { %p319_p8 = scmp.ne.s32.totalorder %s232_s6, %s318_s22  ;;  %p324_p10 = scmp.lt.s32.totalorder %s318_s22, %s318_s22 }
  0x1c   :  { %266 = vmatmul.mubr.msk.bf16.vlgmr.msra.gmra.mrb[0].mxu0 %vm77_vm1, %v283_v3  ;;  %p325_p11 = por %p324_p10, %p323_p9 }
  0x1d   :  { %v128_v39 = vld [vmem:[#allocation4] sm:$0xff] }
  0x1e   :  { %v153_v17 = vld [vmem:[#allocation2] sm:$0xff]  ;;  %p326_p12 = pnand %p325_p11, %p319_p8 }
  0x1f   :  { %v154_v20 = vld [vmem:[#allocation2 + $0x8] sm:$0xff] }
  0xef   :  { %v115_v9 = vpop.f32.mrb[0].mxu0 }
  0xf0   :  { %v116_v10 = vadd.f32 %v251_v8, %v115_v9  ;;  %v267_v11 = vpop.f32.mrb[1].mxu0 }
  0xf1   :  { %v118_v12 = vpop.f32.mrb[2].mxu0 }
  0xf2   :  { %122 = vst [vmem:[#allocation8] sm:$0xff] %v116_v10  ;;  %v119_v13 = vadd.f32 %v251_v8, %v118_v12  ;;  %155 = vmax.xlane.f32.xlu0 %v116_v10  ;;  %v268_v14 = vpop.f32.mrb[3].mxu0 }
  0xf4   :  { %123 = vst [vmem:[#allocation8 + $0x8] sm:$0xff] %v119_v13 }
  0xf6   :  { %157 = vmax.xlane.f32.xlu0 %v119_v13 }
 0x10c   :  { %135 = vperm.xlu0 %280, %v124_v4  }
 0x17f   :  { %v156_v18 = vpop.xlane.xlu0 %155 }
 0x180   :  { %v159_v19 = vmax.f32 %v153_v17, %v156_v18 }
 0x182   :  { %v163_v21 = vsub.f32 %v153_v17, %v159_v19  ;;  %195 = vst.msk [vmem:[#allocation2] sm:$0xff] %vm40_vm2, %v159_v19  ;;  %173 = vperm.xlu1 %279, %v159_v19  }
 0x183   :  { %v158_v22 = vpop.xlane.xlu0 %157 }
 0x184   :  { %v160_v23 = vmax.f32 %v154_v20, %v158_v22 }
 0x186   :  { %v164_v25 = vsub.f32 %v154_v20, %v160_v23  ;;  %196 = vst.msk [vmem:[#allocation2 + $0x8] sm:$0xff] %vm40_vm2, %v160_v23  ;;  %178 = vperm.xlu1 %279, %v160_v23  }
 0x18a   :  { %138 = vperm.xlu1 %279, %v125_v15  }
 0x18b   :  { %v136_v27 = vpop.permute.xlu0 %135 }
 0x18c   :  { %vm140_vm5 = vcmp.eq.s32.totalorder %v127_v26, %v136_v27 }
 0x18d   :  { %v142_v28 = vsel %vm140_vm5, %v116_v10, 0.0 }
 0x18e   :  { %144 = vadd.xlane.f32.xlu0 %v142_v28 }
 0x201   :  { %v174_v29 = vpop.permute.xlu1 %173 }
 0x202   :  { %v181_v30 = vsub.f32 %v116_v10, %v174_v29 }
 0x204   :  { %v183_v31 = vmul.f32 1.442695, %v181_v30 }
 0x205   :  { %v179_v32 = vpop.permute.xlu1 %178 }
 0x206   :  { %284 = vpow2.f32 %v183_v31  ;;  %v182_v33 = vsub.f32 %v119_v13, %v179_v32 }
 0x208   :  { %v185_v34 = vmul.f32 1.442695, %v182_v33 }
 0x209   :  { %v139_v36 = vpop.permute.xlu1 %138 }
 0x20a   :  { %286 = vpow2.f32 %v185_v34  ;;  %vm141_vm6 = vcmp.eq.s32.totalorder %v127_v26, %v139_v36 }
 0x20b   :  { %v143_v38 = vsel %vm141_vm6, %v119_v13, 0.0 }
 0x210   :  { %v285_v35 = vpop.eup %284 }
 0x211   :  { %187 = vadd.xlane.f32.xlu1 %v285_v35 }
 0x214   :  { %v287_v37 = vpop.eup %286 }
 0x215   :  { %189 = vadd.xlane.f32.xlu1 %v287_v37 }
 0x219   :  { %146 = vadd.xlane.f32.xlu1 %v143_v38 }
 0x21b   :  { %v145_v40 = vpop.xlane.xlu0 %144 }
 0x21c   :  { %v148_v41 = vadd.f32 %v145_v40, %v128_v39 }
 0x21e   :  { %151 = vst.msk [vmem:[#allocation4] sm:$0xff] %vm40_vm2, %v148_v41 }
 0x21f   :  { %329 = shalt.err (!%p326_p12)
}
 0x220   :  { %s330_s25 = scalar_lea.hbm %s468_s4, 256 }
 0x221   :  { %p331_p13 = scmp.ne.s32.totalorder %s468_s4, %s330_s25  ;;  %p334_p0 = scmp.lt.u32.totalorder %s330_s25, %s468_s4 }
 0x223   :  { %p336_p1 = pnand %p334_p0, %p331_p13 }
 0x225   :  { %339 = shalt.err (!%p336_p1)
}
 0x226   :  { %s352_s30 = smov 128   ;;  %s353_s7 = smov 8   ;;  %v165_v42 = vmul.f32 1.442695, %v163_v21  ;;  %v167_v43 = vmul.f32 1.442695, %v164_v25 }
 0x227   :  { %237 = dma.vmem_to_hbm [thread:$0]  %s232_s6, 256, %s468_s4, [#allocation7], %s352_s30, %s352_s30, %s353_s7   ;;  %v161_v45 = vld [vmem:[#allocation3] sm:$0xff]  ;;  %v162_v49 = vld [vmem:[#allocation3 + $0x8] sm:$0xff]  ;;  %v129_v54 = vld [vmem:[#allocation4 + $0x8] sm:$0xff] }
 0x228   :  { %288 = vpow2.f32 %v165_v42  ;;  %v206_v61 = vld [vmem:[#allocation2] sm:$0xff]  ;;  %v207_v3 = vld [vmem:[#allocation2 + $0x8] sm:$0xff] }
 0x229   :  { %290 = vpow2.f32 %v167_v43  ;;  %v210_v0 = vld [vmem:[#allocation4] sm:$0xff] }
 0x232   :  { %v289_v44 = vpop.eup %288 }
 0x233   :  { %v169_v46 = vmul.f32 %v289_v44, %v161_v45  ;;  %v291_v47 = vpop.eup %290 }
 0x234   :  { %v170_v51 = vmul.f32 %v291_v47, %v162_v49 }
 0x29e   :  { %v188_v48 = vpop.xlane.xlu1 %187 }
 0x29f   :  { %v191_v50 = vadd.f32 %v188_v48, %v169_v46 }
 0x2a1   :  { %193 = vst.msk [vmem:[#allocation3] sm:$0xff] %vm40_vm2, %v191_v50 }
 0x2a2   :  { %v190_v52 = vpop.xlane.xlu1 %189 }
 0x2a3   :  { %v192_v53 = vadd.f32 %v190_v52, %v170_v51 }
 0x2a5   :  { %194 = vst.msk [vmem:[#allocation3 + $0x8] sm:$0xff] %vm40_vm2, %v192_v53 }
 0x2a6   :  { %v147_v55 = vpop.xlane.xlu1 %146 }
 0x2a7   :  { %v149_v56 = vadd.f32 %v147_v55, %v129_v54 }
 0x2a8   :  { %v200_v57 = vld [vmem:[#allocation3] sm:$0xff] }
 0x2a9   :  { %292 = vlog2.f32 %v200_v57  ;;  %152 = vst.msk [vmem:[#allocation4 + $0x8] sm:$0xff] %vm40_vm2, %v149_v56 }
 0x2ac   :  { %v201_v58 = vld [vmem:[#allocation3 + $0x8] sm:$0xff] }
 0x2ad   :  { %294 = vlog2.f32 %v201_v58 }
 0x2b0   :  { %v211_v7 = vld [vmem:[#allocation4 + $0x8] sm:$0xff] }
 0x2b3   :  { %v293_v59 = vpop.eup %292 }
 0x2b4   :  { %v203_v60 = vmul.f32 0.6931472, %v293_v59 }
 0x2b6   :  { %v208_v62 = vadd.f32 %v206_v61, %v203_v60 }
 0x2b7   :  { %v295_v63 = vpop.eup %294 }
 0x2b8   :  { %v212_v1 = vsub.f32 %v208_v62, %v210_v0  ;;  %v205_v2 = vmul.f32 0.6931472, %v295_v63 }
 0x2ba   :  { %v220_v4 = vmul.f32 %v414_v6, %v212_v1  ;;  %v209_v5 = vadd.f32 %v207_v3, %v205_v2 }
 0x2bc   :  { %222 = vst.msk [vmem:[%s469_s5] sm:$0xff] %vm40_vm2, %v220_v4  ;;  %v213_v8 = vsub.f32 %v209_v5, %v211_v7 }
 0x2be   :  { %v221_v9 = vmul.f32 %v429_v16, %v213_v8 }
 0x2c0   :  { %223 = vst.msk [vmem:[%s469_s5 + $0x8] sm:$0xff] %vm40_vm2, %v221_v9 }
 0x2c1   :  { %342 = dma.done.wait [#allocation7], 256  }
 0x2c2   :  { %343 = vsyncadd [#allocation7], 4294967040 }
 0x2c3   :  { %249 = vsyncpa [#allocation6], 1 }
 0x2c4   :  { %250 = vsyncpa [#allocation7], 1 }

</bundles_post_ra>
